<compile_context>
chip_gen: v6e
topology: v6e:2x2x1
jax: 0.10.0
libtpu: 0.0.40
codegen_flags: <defaults>
</compile_context>

<pallas_src>
import math

import jax
import jax.numpy as jnp
from jax.experimental import pallas as pl
from jax.experimental.pallas import tpu as pltpu


def _pick_batch_tile(N, C, HW, COUT, HOWO, itemsize, sel_bytes):
    """Images per grid step: big enough to amortize per-step overhead, small
    enough for a cross-chip-safe VMEM budget, sublane-aligned x block."""
    per_img = (C * HW + COUT * HOWO) * itemsize            # HBM bytes / image
    # (1) target >= ~2 MiB of HBM traffic per grid step.
    nb = max(1, (2 * 1024 * 1024 + per_img - 1) // per_img)
    # (2) cap so large batches keep many "parallel" steps (v7x 2-TC sharding).
    nb = min(nb, 64, N)
    # (3) VMEM: 2x double-buffered (in + out) blocks + (<=2x) sel under 12 MiB
    #     (fits v5e's 16 MiB default scoped VMEM; ample headroom on v6e/v7x).
    budget = 12 * 1024 * 1024 - 2 * sel_bytes
    nb = max(1, min(nb, budget // (2 * per_img)))
    # (4) x block second-minor dim is nb*C: keep it a multiple of 8 sublanes
    #     unless the block spans the whole array (full-dim block is legal).
    if nb < N:
        m = 8 // math.gcd(C, 8)
        nb = min(N, max(m, (nb // m) * m))
    return int(nb)


def lambda_layer_shortcut(x_nchw, planes=None):
    """x[:, :, ::2, ::2] zero-padded on channels by planes//4 on each side."""
    N, C, H, W = x_nchw.shape
    if planes is None:
        planes = 2 * C                        # bdarts: planes = 2 * in_channels
    HOUT = (H + 1) // 2                       # PyTorch ::2 -> ceil(H/2)
    WOUT = (W + 1) // 2
    PAD = planes // 4
    COUT = C + 2 * PAD
    HW = H * W
    HOWO = HOUT * WOUT
    dtype = x_nchw.dtype

    # Free reshape of a contiguous NCHW array: lane-dense minor dim H*W.
    x_flat = x_nchw.reshape(N * C, HW)

    # Static 0/1 selection matrix implementing the stride-2 spatial subsample
    # on the flattened spatial axis: out[:, ho*WOUT+wo] = in[:, 2*ho*W + 2*wo].
    # Exact in bfloat16 (values are 0/1); gather-as-matmul avoids strided or
    # masked vector loads entirely.
    k = jnp.arange(HOWO, dtype=jnp.int32)
    src = 2 * (k // WOUT) * W + 2 * (k % WOUT)                       # (HOWO,)
    sel = (jnp.arange(HW, dtype=jnp.int32)[:, None] == src[None, :]
           ).astype(jnp.bfloat16)                                    # (HW, HOWO)

    NB = _pick_batch_tile(N, C, HW, COUT, HOWO, x_nchw.dtype.itemsize,
                          sel.size * sel.dtype.itemsize)
    num_steps = pl.cdiv(N, NB)

    def kernel(sel_ref, x_ref, o_ref):
        # x_ref: (NB*C, HW)   sel_ref: (HW, HOWO)   o_ref: (NB, COUT, HOWO)
        # One MXU matmul performs the stride-2 subsample for all NB images.
        sub = jnp.dot(x_ref[...], sel_ref[...],
                      preferred_element_type=jnp.float32).astype(o_ref.dtype)
        if PAD > 0:
            zpad = jnp.zeros((NB, PAD, HOWO), o_ref.dtype)
            o_ref[:, :PAD, :] = zpad             # channel zero-pad (low side)
            o_ref[:, PAD + C:, :] = zpad         # channel zero-pad (high side)
        for b in range(NB):                      # static unroll; aligned for
            o_ref[b, PAD:PAD + C, :] = sub[b * C:(b + 1) * C, :]  # real C>=16

    def build(sel_spec):
        return pl.pallas_call(
            kernel,
            out_shape=jax.ShapeDtypeStruct((N, COUT, HOWO), dtype),
            grid=(num_steps,),
            in_specs=[
                sel_spec,
                pl.BlockSpec((NB * C, HW), lambda n: (n, 0)),
            ],
            out_specs=pl.BlockSpec((NB, COUT, HOWO), lambda n: (n, 0, 0)),
            compiler_params=pltpu.CompilerParams(
                dimension_semantics=("parallel",)),
        )

    try:
        # Constant index_map -> sel is fetched once and stays VMEM-resident;
        # single-buffer it to reclaim VMEM headroom for larger NB tiles.
        out3 = build(pl.BlockSpec((HW, HOWO), lambda n: (0, 0),
                                  pipeline_mode=pl.Buffered(1)))(sel, x_flat)
    except Exception:
        # Fallback if this JAX build rejects pipeline_mode on a top-level
        # pallas_call BlockSpec (costs one extra sel buffer, nothing else).
        out3 = build(pl.BlockSpec((HW, HOWO), lambda n: (0, 0)))(sel, x_flat)

    # Free reshape back to the NCHW output layout.
    return out3.reshape(N, COUT, HOUT, WOUT)


if __name__ == "__main__":
    key = jax.random.PRNGKey(0)
    x = jax.random.normal(key, (2, 4, 16, 16), dtype=jnp.float32)   # NCHW

    out = jax.block_until_ready(lambda_layer_shortcut(x))

    # Pure-JAX reference of the same lambda (NCHW semantics, as in PyTorch).
    pad = (2 * x.shape[1]) // 4
    ref = jnp.pad(x[:, :, ::2, ::2],
                  ((0, 0), (pad, pad), (0, 0), (0, 0)),
                  mode="constant", constant_values=0.0)

    assert out.shape == ref.shape, (out.shape, ref.shape)
    assert jnp.allclose(out, ref, rtol=1e-5, atol=1e-5), "mismatch vs reference"
    print("KERNEL_OK")
</pallas_src>

<mosaic_0001>
module attributes {stable_mosaic.version = 11 : i64} {
  func.func @kernel(%arg0: i32, %arg1: memref<256x64xbf16, #tpu.memory_space<vmem>>, %arg2: memref<8x256xf32, #tpu.memory_space<vmem>>, %arg3: memref<2x8x64xf32, #tpu.memory_space<vmem>>) attributes {dimension_semantics = [#tpu.dimension_semantics<parallel>], iteration_bounds = array<i64: 1>, scalar_prefetch = 0 : i64, scratch_operands = 0 : i64, tpu.core_type = #tpu.core_type<tc>, window_params = [{pipeline_mode = #tpu.pipeline_mode<synchronous>, transform_indices = @transform_0, window_bounds = array<i64: 256, 64>}, {transform_indices = @transform_1, window_bounds = array<i64: 8, 256>}, {transform_indices = @transform_2, window_bounds = array<i64: 2, 8, 64>}]} {
    %c0 = arith.constant 0 : index
    %c0_0 = arith.constant 0 : index
    %0 = vector.load %arg2[%c0, %c0_0] : memref<8x256xf32, #tpu.memory_space<vmem>>, vector<8x256xf32>
    %c0_1 = arith.constant 0 : index
    %c0_2 = arith.constant 0 : index
    %1 = vector.load %arg1[%c0_1, %c0_2] : memref<256x64xbf16, #tpu.memory_space<vmem>>, vector<256x64xbf16>
    %cst = arith.constant dense<0.000000e+00> : vector<8x64xf32>
    %2 = tpu.matmul %0, %1, %cst {dimension_numbers = #tpu.dot_dimension_numbers<[1], [0], [0], [1], [0, 0, 1, 1], [], []>} : vector<8x256xf32>, vector<256x64xbf16>, vector<8x64xf32> -> vector<8x64xf32>
    %cst_3 = arith.constant 0.000000e+00 : f32
    %3 = vector.broadcast %cst_3 : f32 to vector<2x2x64xf32>
    %c0_4 = arith.constant 0 : index
    %c0_5 = arith.constant 0 : index
    %c0_6 = arith.constant 0 : index
    %4 = vector.load %arg3[%c0_4, %c0_5, %c0_6] : memref<2x8x64xf32, #tpu.memory_space<vmem>>, vector<2x2x64xf32>
    tpu.vector_store %arg3[%c0_4, %c0_5, %c0_6], %3 {strides = array<i32>} : memref<2x8x64xf32, #tpu.memory_space<vmem>>, vector<2x2x64xf32>,
    %c0_7 = arith.constant 0 : index
    %c6 = arith.constant 6 : index
    %c0_8 = arith.constant 0 : index
    %5 = vector.load %arg3[%c0_7, %c6, %c0_8] : memref<2x8x64xf32, #tpu.memory_space<vmem>>, vector<2x2x64xf32>
    tpu.vector_store %arg3[%c0_7, %c6, %c0_8], %3 {strides = array<i32>} : memref<2x8x64xf32, #tpu.memory_space<vmem>>, vector<2x2x64xf32>,
    %6 = vector.extract_strided_slice %2 {offsets = [0, 0], sizes = [4, 64], strides = [1, 1]} : vector<8x64xf32> to vector<4x64xf32>
    %c0_9 = arith.constant 0 : index
    %c2 = arith.constant 2 : index
    %c0_10 = arith.constant 0 : index
    %7 = vector.load %arg3[%c0_9, %c2, %c0_10] : memref<2x8x64xf32, #tpu.memory_space<vmem>>, vector<1x4x64xf32>
    %8 = vector.shape_cast %7 : vector<1x4x64xf32> to vector<4x64xf32>
    %9 = vector.shape_cast %6 : vector<4x64xf32> to vector<1x4x64xf32>
    tpu.vector_store %arg3[%c0_9, %c2, %c0_10], %9 {strides = array<i32>} : memref<2x8x64xf32, #tpu.memory_space<vmem>>, vector<1x4x64xf32>,
    %10 = vector.extract_strided_slice %2 {offsets = [4, 0], sizes = [4, 64], strides = [1, 1]} : vector<8x64xf32> to vector<4x64xf32>
    %c1 = arith.constant 1 : index
    %c2_11 = arith.constant 2 : index
    %c0_12 = arith.constant 0 : index
    %11 = vector.load %arg3[%c1, %c2_11, %c0_12] : memref<2x8x64xf32, #tpu.memory_space<vmem>>, vector<1x4x64xf32>
    %12 = vector.shape_cast %11 : vector<1x4x64xf32> to vector<4x64xf32>
    %13 = vector.shape_cast %10 : vector<4x64xf32> to vector<1x4x64xf32>
    tpu.vector_store %arg3[%c1, %c2_11, %c0_12], %13 {strides = array<i32>} : memref<2x8x64xf32, #tpu.memory_space<vmem>>, vector<1x4x64xf32>,
    return
  }
  func.func @transform_0(%arg0: i32) -> (i32, i32) {
    %c0_i32 = arith.constant 0 : i32
    %c0_i32_0 = arith.constant 0 : i32
    %c0_i32_1 = arith.constant 0 : i32
    return %c0_i32, %c0_i32_0 : i32, i32
  }
  func.func @transform_1(%arg0: i32) -> (i32, i32) {
    %c0_i32 = arith.constant 0 : i32
    %c0_i32_0 = arith.constant 0 : i32
    return %arg0, %c0_i32 : i32, i32
  }
  func.func @transform_2(%arg0: i32) -> (i32, i32, i32) {
    %c0_i32 = arith.constant 0 : i32
    %c0_i32_0 = arith.constant 0 : i32
    %c0_i32_1 = arith.constant 0 : i32
    return %arg0, %c0_i32, %c0_i32_0 : i32, i32, i32
  }
}

module attributes {stable_mosaic.version = 11 : i64} {
  func.func @kernel(%arg0: i32, %arg1: memref<256x64xbf16, #tpu.memory_space<vmem>>, %arg2: memref<8x256xf32, #tpu.memory_space<vmem>>, %arg3: memref<2x8x64xf32, #tpu.memory_space<vmem>>) attributes {dimension_semantics = [#tpu.dimension_semantics<parallel>], iteration_bounds = array<i64: 1>, scalar_prefetch = 0 : i64, scratch_operands = 0 : i64, tpu.core_type = #tpu.core_type<tc>, window_params = [{pipeline_mode = #tpu.pipeline_mode<synchronous>, transform_indices = @transform_0, window_bounds = array<i64: 256, 64>}, {transform_indices = @transform_1, window_bounds = array<i64: 8, 256>}, {transform_indices = @transform_2, window_bounds = array<i64: 2, 8, 64>}]} {
    %c0 = arith.constant 0 : index
    %c0_0 = arith.constant 0 : index
    %0 = vector.load %arg2[%c0, %c0_0] : memref<8x256xf32, #tpu.memory_space<vmem>>, vector<8x256xf32>
    %c0_1 = arith.constant 0 : index
    %c0_2 = arith.constant 0 : index
    %1 = vector.load %arg1[%c0_1, %c0_2] : memref<256x64xbf16, #tpu.memory_space<vmem>>, vector<256x64xbf16>
    %cst = arith.constant dense<0.000000e+00> : vector<8x64xf32>
    %2 = tpu.matmul %0, %1, %cst {dimension_numbers = #tpu.dot_dimension_numbers<[1], [0], [0], [1], [0, 0, 1, 1], [], []>} : vector<8x256xf32>, vector<256x64xbf16>, vector<8x64xf32> -> vector<8x64xf32>
    %cst_3 = arith.constant 0.000000e+00 : f32
    %3 = vector.broadcast %cst_3 : f32 to vector<2x2x64xf32>
    %c0_4 = arith.constant 0 : index
    %c0_5 = arith.constant 0 : index
    %c0_6 = arith.constant 0 : index
    %4 = vector.load %arg3[%c0_4, %c0_5, %c0_6] : memref<2x8x64xf32, #tpu.memory_space<vmem>>, vector<2x2x64xf32>
    tpu.vector_store %arg3[%c0_4, %c0_5, %c0_6], %3 {strides = array<i32>} : memref<2x8x64xf32, #tpu.memory_space<vmem>>, vector<2x2x64xf32>,
    %c0_7 = arith.constant 0 : index
    %c6 = arith.constant 6 : index
    %c0_8 = arith.constant 0 : index
    %5 = vector.load %arg3[%c0_7, %c6, %c0_8] : memref<2x8x64xf32, #tpu.memory_space<vmem>>, vector<2x2x64xf32>
    tpu.vector_store %arg3[%c0_7, %c6, %c0_8], %3 {strides = array<i32>} : memref<2x8x64xf32, #tpu.memory_space<vmem>>, vector<2x2x64xf32>,
    %6 = vector.extract_strided_slice %2 {offsets = [0, 0], sizes = [4, 64], strides = [1, 1]} : vector<8x64xf32> to vector<4x64xf32>
    %c0_9 = arith.constant 0 : index
    %c2 = arith.constant 2 : index
    %c0_10 = arith.constant 0 : index
    %7 = vector.load %arg3[%c0_9, %c2, %c0_10] : memref<2x8x64xf32, #tpu.memory_space<vmem>>, vector<1x4x64xf32>
    %8 = vector.shape_cast %7 : vector<1x4x64xf32> to vector<4x64xf32>
    %9 = vector.shape_cast %6 : vector<4x64xf32> to vector<1x4x64xf32>
    tpu.vector_store %arg3[%c0_9, %c2, %c0_10], %9 {strides = array<i32>} : memref<2x8x64xf32, #tpu.memory_space<vmem>>, vector<1x4x64xf32>,
    %10 = vector.extract_strided_slice %2 {offsets = [4, 0], sizes = [4, 64], strides = [1, 1]} : vector<8x64xf32> to vector<4x64xf32>
    %c1 = arith.constant 1 : index
    %c2_11 = arith.constant 2 : index
    %c0_12 = arith.constant 0 : index
    %11 = vector.load %arg3[%c1, %c2_11, %c0_12] : memref<2x8x64xf32, #tpu.memory_space<vmem>>, vector<1x4x64xf32>
    %12 = vector.shape_cast %11 : vector<1x4x64xf32> to vector<4x64xf32>
    %13 = vector.shape_cast %10 : vector<4x64xf32> to vector<1x4x64xf32>
    tpu.vector_store %arg3[%c1, %c2_11, %c0_12], %13 {strides = array<i32>} : memref<2x8x64xf32, #tpu.memory_space<vmem>>, vector<1x4x64xf32>,
    return
  }
  func.func @transform_0(%arg0: i32) -> (i32, i32) {
    %c0_i32 = arith.constant 0 : i32
    %c0_i32_0 = arith.constant 0 : i32
    %c0_i32_1 = arith.constant 0 : i32
    return %c0_i32, %c0_i32_0 : i32, i32
  }
  func.func @transform_1(%arg0: i32) -> (i32, i32) {
    %c0_i32 = arith.constant 0 : i32
    %c0_i32_0 = arith.constant 0 : i32
    return %arg0, %c0_i32 : i32, i32
  }
  func.func @transform_2(%arg0: i32) -> (i32, i32, i32) {
    %c0_i32 = arith.constant 0 : i32
    %c0_i32_0 = arith.constant 0 : i32
    %c0_i32_1 = arith.constant 0 : i32
    return %arg0, %c0_i32, %c0_i32_0 : i32, i32, i32
  }
}

</mosaic_0001>

<bundles_post_ra>
// kernel: tpu_custom_call.1
= control target key start
LH: loop header
LB: loop body
LE: loop exit
PB: predicated region body
PF: predicated region fallthrough
CT: control target
= control target key end

     0   :  { %s360_s0 = inlined_call_operand.vmem [shape: bf16[256,64], index: 0, kind: input, shape index: {}]   ;;  %s361_s1 = inlined_call_operand.vmem [shape: f32[8,256], index: 1, kind: input, shape index: {}]   ;;  %s362_s2 = inlined_call_operand.hbm [shape: f32[2,8,64], index: 2, kind: output, shape index: {}]  }
   0x1   :  { %v246_v0 = vld [vmem:[%s360_s0 + $0x78] sm:$0xff]   ;;  %v248_v2 = vld [vmem:[%s360_s0 + $0x70] sm:$0xff]   ;;  %v250_v4 = vld [vmem:[%s360_s0 + $0x68] sm:$0xff]  }
   0x2   :  { %v247_v1 = vld [vmem:[%s360_s0 + $0x38] sm:$0xff]   ;;  %223 = vmatprep.subr.bf16.mxu0 %v246_v0  ;;  %v249_v3 = vld [vmem:[%s360_s0 + $0x30] sm:$0xff]   ;;  %v251_v5 = vld [vmem:[%s360_s0 + $0x28] sm:$0xff]  }
   0x3   :  { %224 = vmatpush3.bf16.msra.mxu0 %v247_v1  ;;  %v252_v6 = vld [vmem:[%s360_s0 + $0x60] sm:$0xff]   ;;  %v254_v8 = vld [vmem:[%s360_s0 + $0x58] sm:$0xff]   ;;  %v256_v10 = vld [vmem:[%s360_s0 + $0x50] sm:$0xff]  }
   0x4   :  { %225 = vmatprep.subr.bf16.mxu0 %v248_v2  ;;  %v253_v7 = vld [vmem:[%s360_s0 + $0x20] sm:$0xff]   ;;  %v255_v9 = vld [vmem:[%s360_s0 + $0x18] sm:$0xff]   ;;  %v14_v11 = vld [vmem:[%s361_s1 + $0x8] sm:$0xff] }
   0x7   :  { %226 = vmatpush3.bf16.msra.mxu0 %v249_v3 }
   0x8   :  { %227 = vmatprep.subr.bf16.mxu0 %v250_v4 }
   0xb   :  { %228 = vmatpush3.bf16.msra.mxu0 %v251_v5 }
   0xc   :  { %229 = vmatprep.subr.bf16.mxu0 %v252_v6 }
   0xf   :  { %230 = vmatpush3.bf16.msra.mxu0 %v253_v7 }
  0x10   :  { %231 = vmatprep.subr.bf16.mxu0 %v254_v8 }
  0x11   :  { %7 = vsyncpa [#allocation3], 0  ;;  %175 = vmatprep.mubr.f32.mxu0 %v14_v11  ;;  %v257_v12 = vld [vmem:[%s360_s0 + $0x10] sm:$0xff]   ;;  %v258_v13 = vld [vmem:[%s360_s0 + $0x48] sm:$0xff]   ;;  %vm181_vm0 = vcmask 517120   ;;  %v284_v18 = vmov 0.0  }
  0x12   :  { %v259_v14 = vld [vmem:[%s360_s0 + $0x8] sm:$0xff]   ;;  %v260_v15 = vld [vmem:[%s360_s0 + $0x40] sm:$0xff]   ;;  %182 = vst.msk [vmem:[#allocation2] sm:$0x3] %vm181_vm0, %v284_v18  ;;  %183 = vst.msk [vmem:[#allocation2 + $0x8] sm:$0x3] %vm181_vm0, %v284_v18 }
  0x13   :  { %232 = vmatpush3.bf16.msra.mxu0 %v255_v9  ;;  %v261_v16 = vld [vmem:[%s360_s0] sm:$0xff]   ;;  %184 = vst.msk [vmem:[#allocation2 + $0x6] sm:$0x3] %vm181_vm0, %v284_v18  ;;  %185 = vst.msk [vmem:[#allocation2 + $0xe] sm:$0x3] %vm181_vm0, %v284_v18  ;;  %s285_s17 = smov [#allocation2]  }
  0x14   :  { %233 = vmatprep.subr.bf16.mxu0 %v256_v10  ;;  %v13_v17 = vld [vmem:[%s361_s1] sm:$0xff]  ;;  %s196_s18 = sshll.u32 %s285_s17, 4  ;;  %vm186_vm1 = vcmask 519168   ;;  %vm189_vm2 = vcmask 523268   ;;  %s197_s18 = int_to_ptr.vmem [resolvable:$true] %s196_s18 }
  0x15   :  { %s262_s0 = scalar_lea.vmem %s197_s18, 256  ;;  %p267_p1 = scmp.lt.s32.totalorder %s197_s18, %s197_s18 }
  0x16   :  { %p263_p0 = scmp.ne.s32.totalorder %s197_s18, %s262_s0  ;;  %p268_p2 = scmp.lt.s32.totalorder %s262_s0, %s262_s0 }
  0x17   :  { %234 = vmatpush3.bf16.msra.mxu0 %v257_v12 }
  0x18   :  { %235 = vmatprep.subr.bf16.mxu0 %v258_v13  ;;  %p269_p3 = por %p268_p2, %p267_p1 }
  0x1a   :  { %p270_p4 = pnand %p269_p3, %p263_p0 }
  0x1b   :  { %236 = vmatpush3.bf16.msra.mxu0 %v259_v14 }
  0x1c   :  { %237 = vmatprep.subr.bf16.mxu0 %v260_v15 }
  0x1f   :  { %238 = vmatpush3.bf16.msra.mxu0 %v261_v16 }
  0x22   :  { %176 = vmatmul.mubr.f32.vlgmr.msra.gmra.mxu0 %v13_v17 }
  0xe2   :  { %v239_v19 = vpop.f32.mrf.mxu0 }
  0xe4   :  { %v240_v20 = vpop.f32.mrf.mxu0 }
  0xe5   :  { %v241_v21 = vadd.f32 %v240_v20, %v239_v19 }
  0xe7   :  { %187 = vst.msk [vmem:[#allocation2 + $0x2] sm:$0xf] %vm186_vm1, %v241_v21 }
  0xe8   :  { %190 = vst.msk [vmem:[#allocation2 + $0x6] sm:$0xf0] %vm189_vm2, %v241_v21 }
  0xe9   :  { %273 = shalt.err (!%p270_p4)
}
  0xea   :  { %s286_s1 = smov 128   ;;  %s287_s19 = smov 8  }
  0xeb   :  { %202 = dma.vmem_to_hbm [thread:$0]  %s197_s18, 256, %s362_s2, [#allocation3], %s286_s1, %s286_s1, %s287_s19  }
  0xec   :  { %282 = dma.done.wait [#allocation3], 256  }
  0xed   :  { %283 = vsyncadd [#allocation3], 4294967040 }
  0xee   :  { %206 = vsyncpa [#allocation3], 1 }

// kernel: tpu_custom_call.1
= control target key start
LH: loop header
LB: loop body
LE: loop exit
PB: predicated region body
PF: predicated region fallthrough
CT: control target
= control target key end

     0   :  { %s360_s0 = inlined_call_operand.vmem [shape: bf16[256,64], index: 0, kind: input, shape index: {}]   ;;  %s361_s1 = inlined_call_operand.vmem [shape: f32[8,256], index: 1, kind: input, shape index: {}]   ;;  %s362_s2 = inlined_call_operand.hbm [shape: f32[2,8,64], index: 2, kind: output, shape index: {}]  }
   0x1   :  { %v246_v0 = vld [vmem:[%s360_s0 + $0x78] sm:$0xff]   ;;  %v248_v2 = vld [vmem:[%s360_s0 + $0x70] sm:$0xff]   ;;  %v250_v4 = vld [vmem:[%s360_s0 + $0x68] sm:$0xff]  }
   0x2   :  { %v247_v1 = vld [vmem:[%s360_s0 + $0x38] sm:$0xff]   ;;  %223 = vmatprep.subr.bf16.mxu0 %v246_v0  ;;  %v249_v3 = vld [vmem:[%s360_s0 + $0x30] sm:$0xff]   ;;  %v251_v5 = vld [vmem:[%s360_s0 + $0x28] sm:$0xff]  }
   0x3   :  { %224 = vmatpush3.bf16.msra.mxu0 %v247_v1  ;;  %v252_v6 = vld [vmem:[%s360_s0 + $0x60] sm:$0xff]   ;;  %v254_v8 = vld [vmem:[%s360_s0 + $0x58] sm:$0xff]   ;;  %v256_v10 = vld [vmem:[%s360_s0 + $0x50] sm:$0xff]  }
   0x4   :  { %225 = vmatprep.subr.bf16.mxu0 %v248_v2  ;;  %v253_v7 = vld [vmem:[%s360_s0 + $0x20] sm:$0xff]   ;;  %v255_v9 = vld [vmem:[%s360_s0 + $0x18] sm:$0xff]   ;;  %v14_v11 = vld [vmem:[%s361_s1 + $0x8] sm:$0xff] }
   0x7   :  { %226 = vmatpush3.bf16.msra.mxu0 %v249_v3 }
   0x8   :  { %227 = vmatprep.subr.bf16.mxu0 %v250_v4 }
   0xb   :  { %228 = vmatpush3.bf16.msra.mxu0 %v251_v5 }
   0xc   :  { %229 = vmatprep.subr.bf16.mxu0 %v252_v6 }
   0xf   :  { %230 = vmatpush3.bf16.msra.mxu0 %v253_v7 }
  0x10   :  { %231 = vmatprep.subr.bf16.mxu0 %v254_v8 }
  0x11   :  { %7 = vsyncpa [#allocation3], 0  ;;  %175 = vmatprep.mubr.f32.mxu0 %v14_v11  ;;  %v257_v12 = vld [vmem:[%s360_s0 + $0x10] sm:$0xff]   ;;  %v258_v13 = vld [vmem:[%s360_s0 + $0x48] sm:$0xff]   ;;  %vm181_vm0 = vcmask 517120   ;;  %v284_v18 = vmov 0.0  }
  0x12   :  { %v259_v14 = vld [vmem:[%s360_s0 + $0x8] sm:$0xff]   ;;  %v260_v15 = vld [vmem:[%s360_s0 + $0x40] sm:$0xff]   ;;  %182 = vst.msk [vmem:[#allocation2] sm:$0x3] %vm181_vm0, %v284_v18  ;;  %183 = vst.msk [vmem:[#allocation2 + $0x8] sm:$0x3] %vm181_vm0, %v284_v18 }
  0x13   :  { %232 = vmatpush3.bf16.msra.mxu0 %v255_v9  ;;  %v261_v16 = vld [vmem:[%s360_s0] sm:$0xff]   ;;  %184 = vst.msk [vmem:[#allocation2 + $0x6] sm:$0x3] %vm181_vm0, %v284_v18  ;;  %185 = vst.msk [vmem:[#allocation2 + $0xe] sm:$0x3] %vm181_vm0, %v284_v18  ;;  %s285_s17 = smov [#allocation2]  }
  0x14   :  { %233 = vmatprep.subr.bf16.mxu0 %v256_v10  ;;  %v13_v17 = vld [vmem:[%s361_s1] sm:$0xff]  ;;  %s196_s18 = sshll.u32 %s285_s17, 4  ;;  %vm186_vm1 = vcmask 519168   ;;  %vm189_vm2 = vcmask 523268   ;;  %s197_s18 = int_to_ptr.vmem [resolvable:$true] %s196_s18 }
  0x15   :  { %s262_s0 = scalar_lea.vmem %s197_s18, 256  ;;  %p267_p1 = scmp.lt.s32.totalorder %s197_s18, %s197_s18 }
  0x16   :  { %p263_p0 = scmp.ne.s32.totalorder %s197_s18, %s262_s0  ;;  %p268_p2 = scmp.lt.s32.totalorder %s262_s0, %s262_s0 }
  0x17   :  { %234 = vmatpush3.bf16.msra.mxu0 %v257_v12 }
  0x18   :  { %235 = vmatprep.subr.bf16.mxu0 %v258_v13  ;;  %p269_p3 = por %p268_p2, %p267_p1 }
  0x1a   :  { %p270_p4 = pnand %p269_p3, %p263_p0 }
  0x1b   :  { %236 = vmatpush3.bf16.msra.mxu0 %v259_v14 }
  0x1c   :  { %237 = vmatprep.subr.bf16.mxu0 %v260_v15 }
  0x1f   :  { %238 = vmatpush3.bf16.msra.mxu0 %v261_v16 }
  0x22   :  { %176 = vmatmul.mubr.f32.vlgmr.msra.gmra.mxu0 %v13_v17 }
  0xe2   :  { %v239_v19 = vpop.f32.mrf.mxu0 }
  0xe4   :  { %v240_v20 = vpop.f32.mrf.mxu0 }
  0xe5   :  { %v241_v21 = vadd.f32 %v240_v20, %v239_v19 }
  0xe7   :  { %187 = vst.msk [vmem:[#allocation2 + $0x2] sm:$0xf] %vm186_vm1, %v241_v21 }
  0xe8   :  { %190 = vst.msk [vmem:[#allocation2 + $0x6] sm:$0xf0] %vm189_vm2, %v241_v21 }
  0xe9   :  { %273 = shalt.err (!%p270_p4)
}
  0xea   :  { %s286_s1 = smov 128   ;;  %s287_s19 = smov 8  }
  0xeb   :  { %202 = dma.vmem_to_hbm [thread:$0]  %s197_s18, 256, %s362_s2, [#allocation3], %s286_s1, %s286_s1, %s287_s19  }
  0xec   :  { %282 = dma.done.wait [#allocation3], 256  }
  0xed   :  { %283 = vsyncadd [#allocation3], 4294967040 }
  0xee   :  { %206 = vsyncpa [#allocation3], 1 }

</bundles_post_ra>
